<compile_context>
chip_gen: v7x
topology: tpu7x:2x2x1
jax: 0.10.0
libtpu: 0.0.40
codegen_flags: <defaults>
</compile_context>

<pallas_src>
import jax
import jax.numpy as jnp
from jax.experimental import pallas as pl
from jax.experimental.pallas import tpu as pltpu


_TINY_BYTES = 4 * 1024 * 1024      # below this, XLA's fused add beats pallas_call overhead
_VMEM_LIMIT_FLOOR = 8 * 1024 * 1024
_VMEM_LIMIT_CAP = 40 * 1024 * 1024  # safe on v7x's 64 MiB physical VMEM


def _add_pos_kernel(x_ref, pos_ref, o_ref):
    # x_ref: (Bt, Ft)   flattened (batch_tile, seq*d_model tile)
    # pos_ref: (1, Ft)  shared positional slab (native dtype), broadcast over rows
    # o_ref: (Bt, Ft)
    pos = pos_ref[...].astype(x_ref.dtype)        # in-kernel cast: free on a DMA-bound kernel
    o_ref[...] = (x_ref[...] + pos).astype(o_ref.dtype)


def _sublane_multiple(itemsize: int) -> int:
    # Native vreg sublane packing: f32 -> 8 rows, bf16 -> 16, int8/fp8 -> 32.
    return max(8, 32 // max(1, itemsize))


def _target_tile_bytes() -> int:
    """Per-generation x-tile target (bytes per grid step)."""
    try:
        vmem = pltpu.get_tpu_info().vmem_capacity_bytes
    except Exception:
        vmem = 128 * 1024 * 1024
    if vmem <= 64 * 1024 * 1024:
        # v7x-class: high HBM BW makes per-step overhead costly -> bigger tiles,
        # but keep double-buffered footprint well under 64 MiB.
        return 6 * 1024 * 1024
    # v5e / v6e: 128 MiB VMEM, ~4 MiB tiles already sit at ~86% of the roofline.
    return 4 * 1024 * 1024


def _choose_tiles(B: int, F: int, itemsize: int, target_bytes: int):
    """Pick (Bt, Ft) so the x tile is ~target_bytes and TPU layout rules hold.

    Second-last (sublane) block dim must be a multiple of the dtype's sublane
    packing (or equal the full dim); last (lane) block dim must be a multiple
    of 128 (or equal the full dim).
    """
    sub = _sublane_multiple(itemsize)
    row_bytes = max(1, F * itemsize)

    if sub * row_bytes <= target_bytes:
        # Whole feature slab per block; pack as many batch rows as fit in budget.
        # (Condition guarantees at least one full sublane group fits -> no cliff.)
        Ft = F                                   # equals full dim -> always legal
        rows = max(1, target_bytes // row_bytes)
        if rows >= B:
            Bt = B                               # full batch dim -> legal
        else:
            Bt = max(sub, (rows // sub) * sub)   # multiple of sublane packing
            if Bt >= B:
                Bt = B
    else:
        # Feature slab too big: tile features in multiples of 128 lanes.
        Bt = B if B <= sub else sub
        Ft = max(128, (target_bytes // (Bt * itemsize)) // 128 * 128)
        Ft = min(Ft, F)
    return Bt, Ft


def learned_positional_encoding(x: jax.Array, pos_table: jax.Array,
                                *, force_pallas: bool = False,
                                donate_x: bool = False) -> jax.Array:
    """x: (B, S, D); pos_table: (max_len, D) with max_len >= S."""
    B, S, D = x.shape
    assert pos_table.shape[0] >= S and pos_table.shape[1] == D

    # arange(0, S) gather == static leading slice of the table (glue, plain JAX).
    pos = pos_table[:S]                          # (S, D), native dtype (cast in kernel)

    itemsize = jnp.dtype(x.dtype).itemsize
    if not force_pallas and B * S * D * itemsize < _TINY_BYTES:
        # Small problem: XLA's fused add beats the pallas_call launch overhead
        # and can fuse with neighboring ops.
        return x + pos[None, :, :].astype(x.dtype)

    # Lane-dense flattened layout: (B, S*D) / (1, S*D) -> unmasked full vst.
    F = S * D
    x2 = x.reshape(B, F)
    pos2 = pos.reshape(1, F)
    pos_itemsize = jnp.dtype(pos2.dtype).itemsize

    target = _target_tile_bytes()
    Bt, Ft = _choose_tiles(B, F, itemsize, target)
    nf = pl.cdiv(F, Ft)
    nb = pl.cdiv(B, Bt)

    # VMEM limit derived from the actual tiles: double-buffered x + out + pos,
    # plus ~30% headroom; clamped so it is always valid on v7x.
    x_tile_bytes = Bt * Ft * itemsize
    pos_tile_bytes = Ft * pos_itemsize
    vmem_bytes = int(1.3 * (4 * x_tile_bytes + 2 * pos_tile_bytes))
    vmem_bytes = max(_VMEM_LIMIT_FLOOR, min(vmem_bytes, _VMEM_LIMIT_CAP))

    if nf == 1:
        # Common case: single feature block. Emit a 1-D grid over batch blocks
        # so the batch axis is what the v7x megacore splits across TensorCores.
        grid = (nb,)
        in_specs = [
            pl.BlockSpec((Bt, F), lambda b: (b, 0)),    # x tile
            pl.BlockSpec((1, F), lambda b: (0, 0)),     # shared pos slab
        ]
        out_specs = pl.BlockSpec((Bt, F), lambda b: (b, 0))
        dim_sem = ("parallel",)
    else:
        # Feature outer, batch inner -> pos block index constant across the
        # inner axis, so pos HBM traffic stays O(S*D), not O(B*S*D).
        grid = (nf, nb)
        in_specs = [
            pl.BlockSpec((Bt, Ft), lambda f, b: (b, f)),
            pl.BlockSpec((1, Ft), lambda f, b: (0, f)),
        ]
        out_specs = pl.BlockSpec((Bt, Ft), lambda f, b: (b, f))
        dim_sem = ("parallel", "parallel")

    out2 = pl.pallas_call(
        _add_pos_kernel,
        out_shape=jax.ShapeDtypeStruct((B, F), x.dtype),
        grid=grid,
        in_specs=in_specs,
        out_specs=out_specs,
        input_output_aliases=({0: 0} if donate_x else {}),
        compiler_params=pltpu.CompilerParams(
            dimension_semantics=dim_sem,
            vmem_limit_bytes=vmem_bytes,
        ),
    )(x2, pos2)

    return out2.reshape(B, S, D)


if __name__ == "__main__":
    # Module hyperparameters (small, deterministic)
    d_model = 32
    max_len = 16
    dropout = 0.1  # identity at inference

    batch, seq_len = 2, 8

    key = jax.random.PRNGKey(0)
    k_x, k_emb = jax.random.split(key)

    # Deterministic "learned" embedding table, nn.Embedding-style N(0,1) init.
    pos_table = jax.random.normal(k_emb, (max_len, d_model), dtype=jnp.float32)
    x = jax.random.normal(k_x, (batch, seq_len, d_model), dtype=jnp.float32)

    # force_pallas so the kernel itself is exercised even at this tiny demo size.
    out = learned_positional_encoding(x, pos_table, force_pallas=True)
    out = jax.block_until_ready(out)

    ref = x + pos_table[:seq_len][None, :, :]
    assert out.shape == (batch, seq_len, d_model)
    assert jnp.allclose(out, ref, atol=1e-6, rtol=1e-6)

    # Mixed-dtype path: bf16 activations + f32 table, cast happens inside the kernel.
    x_bf16 = x.astype(jnp.bfloat16)
    out_bf16 = jax.block_until_ready(
        learned_positional_encoding(x_bf16, pos_table, force_pallas=True))
    ref_bf16 = x_bf16 + pos_table[:seq_len][None, :, :].astype(jnp.bfloat16)
    assert out_bf16.dtype == jnp.bfloat16
    assert jnp.allclose(out_bf16.astype(jnp.float32), ref_bf16.astype(jnp.float32),
                        atol=2e-2, rtol=2e-2)

    # Sanity-check the tiny-shape XLA fast path dispatch.
    out_fast = jax.block_until_ready(learned_positional_encoding(x, pos_table))
    assert jnp.allclose(out_fast, ref, atol=1e-6, rtol=1e-6)

    print("KERNEL_OK")
</pallas_src>

<mosaic_0001>
module attributes {stable_mosaic.version = 11 : i64} {
  func.func @_add_pos_kernel(%arg0: i32, %arg1: memref<2x256xf32, #tpu.memory_space<vmem>>, %arg2: memref<1x256xf32, #tpu.memory_space<vmem>>, %arg3: memref<2x256xf32, #tpu.memory_space<vmem>>) attributes {dimension_semantics = [#tpu.dimension_semantics<parallel>], iteration_bounds = array<i64: 1>, scalar_prefetch = 0 : i64, scratch_operands = 0 : i64, tpu.core_type = #tpu.core_type<tc>, window_params = [{transform_indices = @transform_0, window_bounds = array<i64: 2, 256>}, {pipeline_mode = #tpu.pipeline_mode<synchronous>, transform_indices = @transform_1, window_bounds = array<i64: 1, 256>}, {transform_indices = @transform_2, window_bounds = array<i64: 2, 256>}]} {
    %c0 = arith.constant 0 : index
    %c0_0 = arith.constant 0 : index
    %0 = vector.load %arg2[%c0, %c0_0] : memref<1x256xf32, #tpu.memory_space<vmem>>, vector<1x256xf32>
    %c0_1 = arith.constant 0 : index
    %c0_2 = arith.constant 0 : index
    %1 = vector.load %arg1[%c0_1, %c0_2] : memref<2x256xf32, #tpu.memory_space<vmem>>, vector<2x256xf32>
    %2 = vector.broadcast %0 : vector<1x256xf32> to vector<2x256xf32>
    %3 = arith.addf %1, %2 : vector<2x256xf32>
    %c0_3 = arith.constant 0 : index
    %c0_4 = arith.constant 0 : index
    %4 = vector.load %arg3[%c0_3, %c0_4] : memref<2x256xf32, #tpu.memory_space<vmem>>, vector<2x256xf32>
    tpu.vector_store %arg3[%c0_3, %c0_4], %3 {strides = array<i32>} : memref<2x256xf32, #tpu.memory_space<vmem>>, vector<2x256xf32>,
    return
  }
  func.func @transform_0(%arg0: i32) -> (i32, i32) {
    %c0_i32 = arith.constant 0 : i32
    %c0_i32_0 = arith.constant 0 : i32
    return %arg0, %c0_i32 : i32, i32
  }
  func.func @transform_1(%arg0: i32) -> (i32, i32) {
    %c0_i32 = arith.constant 0 : i32
    %c0_i32_0 = arith.constant 0 : i32
    %c0_i32_1 = arith.constant 0 : i32
    return %c0_i32, %c0_i32_0 : i32, i32
  }
  func.func @transform_2(%arg0: i32) -> (i32, i32) {
    %c0_i32 = arith.constant 0 : i32
    %c0_i32_0 = arith.constant 0 : i32
    return %arg0, %c0_i32 : i32, i32
  }
}

</mosaic_0001>

<bundles_post_ra>
// kernel: tpu_custom_call.1
= control target key start
LH: loop header
LB: loop body
LE: loop exit
PB: predicated region body
PF: predicated region fallthrough
CT: control target
= control target key end

     0   :  { %7 = vsyncpa [#allocation3], 0  ;;  %s157_s0 = inlined_call_operand.hbm [shape: f32[2,256], index: 0, kind: input, shape index: {}]   ;;  %s158_s1 = inlined_call_operand.vmem [shape: f32[1,256], index: 1, kind: input, shape index: {}]   ;;  %s159_s2 = inlined_call_operand.hbm [shape: f32[2,256], index: 2, kind: output, shape index: {}]  }
   0x1   :  { %8 = vsyncpa [#allocation4], 0  ;;  %s112_s9 = smov [#allocation2]   ;;  %s64_s13 = scalar_lea.hbm %s157_s0, 64 }
   0x2   :  { %s15_s10 = sshll.u32 %s112_s9, 4  ;;  %p65_p0 = scmp.ne.s32.totalorder %s157_s0, %s64_s13  ;;  %s16_s10 = int_to_ptr.vmem [resolvable:$true] %s15_s10 }
   0x3   :  { %p68_p1 = scmp.lt.u32.totalorder %s64_s13, %s157_s0 }
   0x5   :  { %p70_p2 = pnand %p68_p1, %p65_p0 }
   0x7   :  { %73 = shalt.err (!%p70_p2)
}
   0x8   :  { %s74_s18 = scalar_lea.vmem %s16_s10, 64  ;;  %p79_p4 = scmp.lt.s32.totalorder %s16_s10, %s16_s10 }
   0x9   :  { %p75_p3 = scmp.ne.s32.totalorder %s16_s10, %s74_s18  ;;  %p80_p5 = scmp.lt.s32.totalorder %s74_s18, %s74_s18 }
   0xb   :  { %p81_p6 = por %p80_p5, %p79_p4 }
   0xd   :  { %p82_p7 = pnand %p81_p6, %p75_p3 }
   0xf   :  { %85 = shalt.err (!%p82_p7)
}
  0x10   :  { %18 = dma.hbm_to_vmem [thread:$0]  %s157_s0, 64, %s16_s10, [#allocation3]  }
  0x11   :  { %108 = dma.done.wait [#allocation3], 64  }
  0x12   :  { %109 = vsyncadd [#allocation3], 4294967232  ;;  %v27_v0 = vlaneseq  ;;  %v113_v1 = vmov 1983009808   ;;  %v24_v7 = vld [vmem:[%s158_s1] sm:$0x3] }
  0x13   :  { %v37_v2 = vunpack.c.l.s4 %v113_v1  ;;  %v25_v12 = vld [vmem:[#allocation2] sm:$0xf]  ;;  %s114_s23 = smov [#allocation5]  }
  0x14   :  { %v28_v3 = vshrl.u32 %v27_v0, 7  ;;  %s52_s0 = sshll.u32 %s114_s23, 4  ;;  %s53_s0 = int_to_ptr.vmem [resolvable:$true] %s52_s0 }
  0x15   :  { %v38_v6 = vunpack.c.0.s8 %v37_v2  ;;  %s86_s24 = scalar_lea.vmem %s53_s0, 64  ;;  %p91_p9 = scmp.lt.s32.totalorder %s53_s0, %s53_s0 }
  0x16   :  { %v29_v4 = vsub.s32 0, %v28_v3  ;;  %v33_v5 = vsub.s32 1, %v28_v3  ;;  %p87_p8 = scmp.ne.s32.totalorder %s53_s0, %s86_s24  ;;  %p92_p10 = scmp.lt.s32.totalorder %s86_s24, %s86_s24 }
  0x17   :  { %v41_v10 = vsub.s32 %v38_v6, %v28_v3 }
  0x18   :  { %v30_v8 = vrot.slane %v24_v7, %v29_v4  ;;  %v34_v9 = vrot.slane %v24_v7, %v33_v5  ;;  %p93_p11 = por %p92_p10, %p91_p9 }
  0x1a   :  { %v35_v11 = vcombine.low %v30_v8, %v34_v9  ;;  %p94_p12 = pnand %p93_p11, %p87_p8 }
  0x1c   :  { %v42_v13 = vrot.slane %v35_v11, %v41_v10 }
  0x1e   :  { %v44_v14 = vadd.f32 %v42_v13, %v25_v12 }
  0x20   :  { %45 = vst [vmem:[#allocation5] sm:$0xf] %v44_v14 }
  0x21   :  { %97 = shalt.err (!%p94_p12)
}
  0x22   :  { %s98_s26 = scalar_lea.hbm %s159_s2, 64 }
  0x23   :  { %p99_p13 = scmp.ne.s32.totalorder %s159_s2, %s98_s26  ;;  %p102_p0 = scmp.lt.u32.totalorder %s98_s26, %s159_s2 }
  0x25   :  { %p104_p1 = pnand %p102_p0, %p99_p13 }
  0x27   :  { %107 = shalt.err (!%p104_p1)
}
  0x28   :  { %55 = dma.vmem_to_hbm [thread:$0]  %s53_s0, 64, %s159_s2, [#allocation4]  }
  0x29   :  { %110 = dma.done.wait [#allocation4], 64  }
  0x2a   :  { %111 = vsyncadd [#allocation4], 4294967232 }
  0x2b   :  { %59 = vsyncpa [#allocation3], 1 }
  0x2c   :  { %60 = vsyncpa [#allocation4], 1 }

</bundles_post_ra>
